<compile_context>
chip_gen: v5e
topology: v5e:2x2
jax: 0.10.0
libtpu: 0.0.40
codegen_flags: <defaults>
</compile_context>

<pallas_src>
import jax
import jax.numpy as jnp
from jax.experimental import pallas as pl
from jax.experimental.pallas import tpu as pltpu

_TARGET_BLOCK_BYTES = 2 * 1024 * 1024  # ~2 MiB per block (amortizes ~0.35us/step)


def _copy_kernel(x_ref, o_ref):
    # Pure pass-through of the current block (the module's forward has no ops).
    o_ref[...] = x_ref[...]


def _pick_layout(total, itemsize):
    """Choose a lane-dense (rows, cols) layout and a row tile size.

    Returns (rows, cols, row_tile).  row_tile always divides rows exactly and
    the resulting block shape is either (8,128)-divisible or equal to the full
    array dims, so it is legal on every TPU generation.
    """
    cols = None
    for cand in (4096, 2048, 1024, 512, 256, 128):
        if total % cand == 0:
            cols = cand
            break
    if cols is None:
        # TODO(synk): element count not a multiple of 128 -> single full-block
        # fallback (masked partial stores); a padded lane-dense path could be
        # added if such shapes ever matter.
        return 1, total, 1

    rows = total // cols
    target_rows = max(8, (_TARGET_BLOCK_BYTES // (cols * itemsize)) // 8 * 8)
    if rows <= target_rows or rows % 8 != 0:
        # Small (or oddly shaped) input: single block equal to the full array.
        return rows, cols, rows

    tr = min(rows, target_rows)
    tr -= tr % 8
    while rows % tr != 0:   # rows % 8 == 0 here, so this terminates at >= 8
        tr -= 8
    return rows, cols, tr


def temp_forward_pallas(x):
    """Tiled, lane-dense, input-aliased identity pass over x.  Returns x's values."""
    orig_shape = x.shape
    total = x.size
    rows, cols, tr = _pick_layout(total, jnp.dtype(x.dtype).itemsize)
    x2d = x.reshape(rows, cols)

    out2d = pl.pallas_call(
        _copy_kernel,
        out_shape=jax.ShapeDtypeStruct((rows, cols), x.dtype),
        grid=(rows // tr,),
        in_specs=[pl.BlockSpec((tr, cols), lambda i: (i, 0))],
        out_specs=pl.BlockSpec((tr, cols), lambda i: (i, 0)),
        input_output_aliases={0: 0},
        compiler_params=pltpu.CompilerParams(
            dimension_semantics=("parallel",),
        ),
    )(x2d)

    return out2d.reshape(orig_shape)


def temp_forward(x):
    """Exact semantics of the PyTorch module: `def forward(self, x): pass` -> None.

    Per the performance review, no kernel is launched here: the reference does
    zero work, so the optimal lowering is to do zero work.
    """
    del x
    return None


if __name__ == "__main__":
    key = jax.random.PRNGKey(0)

    # jit + donate so input_output_aliases actually reuses the input HBM buffer.
    run = jax.jit(temp_forward_pallas, donate_argnums=(0,))

    # --- Case 1: lane-dense tiled path (element count multiple of 128) ------
    shape1 = (2, 4, 16, 16)
    x1 = jax.random.normal(key, shape1, dtype=jnp.float32)
    y1 = run(x1)
    jax.block_until_ready(y1)
    x1_ref = jax.random.normal(key, shape1, dtype=jnp.float32)  # x1 was donated
    assert y1.shape == shape1
    assert bool(jnp.array_equal(y1, x1_ref))

    # --- Case 2: fallback single-block path (not a multiple of 128) ---------
    shape2 = (2, 3, 10, 10)
    key2 = jax.random.fold_in(key, 1)
    x2 = jax.random.normal(key2, shape2, dtype=jnp.float32)
    run2 = jax.jit(temp_forward_pallas, donate_argnums=(0,))
    y2 = run2(x2)
    jax.block_until_ready(y2)
    x2_ref = jax.random.normal(key2, shape2, dtype=jnp.float32)  # x2 was donated
    assert y2.shape == shape2
    assert bool(jnp.array_equal(y2, x2_ref))

    # --- Literal module semantics: forward returns None (no kernel run) -----
    assert temp_forward(x1_ref) is None

    print("KERNEL_OK")
</pallas_src>

<mosaic_0001>
module attributes {stable_mosaic.version = 11 : i64} {
  func.func @_copy_kernel(%arg0: i32, %arg1: memref<1x2048xf32, #tpu.memory_space<vmem>>, %arg2: memref<1x2048xf32, #tpu.memory_space<vmem>>) attributes {dimension_semantics = [#tpu.dimension_semantics<parallel>], iteration_bounds = array<i64: 1>, scalar_prefetch = 0 : i64, scratch_operands = 0 : i64, tpu.core_type = #tpu.core_type<tc>, window_params = [{transform_indices = @transform_0, window_bounds = array<i64: 1, 2048>}, {transform_indices = @transform_1, window_bounds = array<i64: 1, 2048>}]} {
    %c0 = arith.constant 0 : index
    %c0_0 = arith.constant 0 : index
    %0 = vector.load %arg1[%c0, %c0_0] : memref<1x2048xf32, #tpu.memory_space<vmem>>, vector<1x2048xf32>
    %c0_1 = arith.constant 0 : index
    %c0_2 = arith.constant 0 : index
    %1 = vector.load %arg2[%c0_1, %c0_2] : memref<1x2048xf32, #tpu.memory_space<vmem>>, vector<1x2048xf32>
    tpu.vector_store %arg2[%c0_1, %c0_2], %0 {strides = array<i32>} : memref<1x2048xf32, #tpu.memory_space<vmem>>, vector<1x2048xf32>,
    return
  }
  func.func @transform_0(%arg0: i32) -> (i32, i32) {
    %c0_i32 = arith.constant 0 : i32
    %c0_i32_0 = arith.constant 0 : i32
    return %arg0, %c0_i32 : i32, i32
  }
  func.func @transform_1(%arg0: i32) -> (i32, i32) {
    %c0_i32 = arith.constant 0 : i32
    %c0_i32_0 = arith.constant 0 : i32
    return %arg0, %c0_i32 : i32, i32
  }
}

</mosaic_0001>

<bundles_post_ra>
// kernel: temp_forward_pallas.1
= control target key start
LH: loop header
LB: loop body
LE: loop exit
PB: predicated region body
PF: predicated region fallthrough
CT: control target
= control target key end

     0   :  { %s38_s0 = inlined_call_operand.vmem [shape: f32[1,2048], index: 0, kind: input, shape index: {}, may-alias: {0,1}]   ;;  %s39_s1 = inlined_call_operand.vmem [shape: f32[1,2048], index: 1, kind: output, shape index: {}, may-alias: {0,1}]  }
   0x1   :  { %v8_v0 = vld [vmem:[%s38_s0] sm:$0xff]  ;;  %v9_v1 = vld [vmem:[%s38_s0 + $0x8] sm:$0xff] }
   0x2   :  { %10 = vst [vmem:[%s39_s1] sm:$0xff] %v8_v0 }
   0x3   :  { %11 = vst [vmem:[%s39_s1 + $0x8] sm:$0xff] %v9_v1 }

</bundles_post_ra>
